<compile_context>
chip_gen: v7x
topology: tpu7x:2x2x1
jax: 0.10.0
libtpu: 0.0.40
codegen_flags: <defaults>
</compile_context>

<pallas_src>
import functools

import jax
import jax.numpy as jnp
from jax.experimental import pallas as pl
from jax.experimental.pallas import tpu as pltpu


def _rtg_rmsnorm_kernel(x_ref, xres_ref, gate_ref, o_ref, *, eps):
    # x_ref / xres_ref / o_ref: (TS, D) tile; gate_ref: (1, D) for this batch.
    xr = xres_ref[...].astype(jnp.float32)                      # (TS, D) fp32
    mean_sq = jnp.mean(xr * xr, axis=-1, keepdims=True)         # (TS, 1)   XLU
    scale = jax.lax.rsqrt(mean_sq + eps)                        # (TS, 1)   EUP
    tanh_gate = jnp.tanh(gate_ref[...])                         # (1, D)    EUP, gate dtype
    # Single expression chain keeps the fp32 working set minimal (no extra
    # full-tile fp32 temporaries beyond xr itself).
    o_ref[...] = x_ref[...] + (xr * scale * tanh_gate).astype(o_ref.dtype)


def _choose_tile_s(S, D, itemsize):
    """Largest sequence tile whose double-buffered in/out tiles plus fp32
    temporaries stay under ~24 MiB, so the kernel fits the default scoped
    VMEM on all generations (v5e 16 MiB ... v7x 64 MiB physical) with the
    48 MiB limit requested below, while keeping per-step overhead amortized."""
    budget = 24 * 1024 * 1024
    # x + x_res + out, each double-buffered (6 * itemsize B/elem), plus ~two
    # fp32 full-tile temporaries (8 B/elem) of headroom.
    bytes_per_row = D * (6 * itemsize + 8)
    ts = budget // max(bytes_per_row, 1)
    ts = int(min(ts, 1024, S))
    if ts >= S:
        return S                        # single tile: block dim == full array dim
    return max(16, (ts // 16) * 16)     # sublane-aligned (16 covers bf16 packing)


def residual_tanh_gated_rmsnorm(x, x_res, gate, eps=1e-6):
    """x, x_res: [B, S, D]; gate: [B, 1, D]. Returns [B, S, D] in x.dtype."""
    B, S, D = x.shape
    assert x_res.shape == (B, S, D)
    assert gate.shape == (B, 1, D)

    ts = _choose_tile_s(S, D, jnp.dtype(x.dtype).itemsize)
    n_s = pl.cdiv(S, ts)

    kernel = functools.partial(_rtg_rmsnorm_kernel, eps=eps)
    tile_spec = pl.BlockSpec((pl.Squeezed(), ts, D), lambda b, s: (b, s, 0))
    gate_spec = pl.BlockSpec((pl.Squeezed(), 1, D), lambda b, s: (b, 0, 0))

    return pl.pallas_call(
        kernel,
        out_shape=jax.ShapeDtypeStruct((B, S, D), x.dtype),
        grid=(B, n_s),                      # S-tiles innermost: gate stays resident
        in_specs=[tile_spec, tile_spec, gate_spec],
        out_specs=tile_spec,
        input_output_aliases={0: 0},        # out reuses x's buffer (out = x + delta)
        compiler_params=pltpu.CompilerParams(
            dimension_semantics=("parallel", "parallel"),
            vmem_limit_bytes=48 * 1024 * 1024,
        ),
    )(x, x_res, gate)


def _reference(x, x_res, gate, eps=1e-6):
    x_res_f32 = x_res.astype(jnp.float32)
    mean_square = jnp.mean(x_res_f32 ** 2, axis=-1, keepdims=True)
    scale = jax.lax.rsqrt(mean_square + eps)
    x_normed = x_res_f32 * scale * jnp.tanh(gate)
    return x + x_normed.astype(x.dtype)


if __name__ == "__main__":
    # Small, deterministic example shapes consistent with the module's forward.
    B, S, D = 2, 8, 32
    dtype = jnp.bfloat16

    key = jax.random.PRNGKey(0)
    kx, kr, kg = jax.random.split(key, 3)
    x = jax.random.normal(kx, (B, S, D), dtype=dtype)
    x_res = jax.random.normal(kr, (B, S, D), dtype=dtype)
    gate = jax.random.normal(kg, (B, 1, D), dtype=dtype)

    # Compute the reference first (the kernel's output may alias x's buffer).
    ref = _reference(x, x_res, gate)

    out = residual_tanh_gated_rmsnorm(x, x_res, gate)
    out = jax.block_until_ready(out)

    assert out.shape == (B, S, D) and out.dtype == dtype
    assert jnp.allclose(out.astype(jnp.float32), ref.astype(jnp.float32),
                        atol=2e-2, rtol=2e-2), "mismatch vs reference"

    print("KERNEL_OK")
</pallas_src>

<mosaic_0001>
module attributes {stable_mosaic.version = 11 : i64} {
  func.func @_rtg_rmsnorm_kernel(%arg0: i32, %arg1: i32, %arg2: memref<1x8x32xbf16, #tpu.memory_space<vmem>>, %arg3: memref<1x8x32xbf16, #tpu.memory_space<vmem>>, %arg4: memref<1x1x32xbf16, #tpu.memory_space<vmem>>, %arg5: memref<1x8x32xbf16, #tpu.memory_space<vmem>>) attributes {dimension_semantics = [#tpu.dimension_semantics<parallel>, #tpu.dimension_semantics<parallel>], iteration_bounds = array<i64: 2, 1>, scalar_prefetch = 0 : i64, scratch_operands = 0 : i64, tpu.core_type = #tpu.core_type<tc>, window_params = [{transform_indices = @transform_0, window_bounds = array<i64: 1, 8, 32>}, {transform_indices = @transform_1, window_bounds = array<i64: 1, 8, 32>}, {transform_indices = @transform_2, window_bounds = array<i64: 1, 1, 32>}, {transform_indices = @transform_3, window_bounds = array<i64: 1, 8, 32>}]} {
    %c0 = arith.constant 0 : index
    %c0_0 = arith.constant 0 : index
    %c0_1 = arith.constant 0 : index
    %0 = vector.load %arg3[%c0, %c0_0, %c0_1] : memref<1x8x32xbf16, #tpu.memory_space<vmem>>, vector<1x8x32xbf16>
    %1 = vector.shape_cast %0 : vector<1x8x32xbf16> to vector<8x32xbf16>
    %2 = arith.extf %1 : vector<8x32xbf16> to vector<8x32xf32>
    %3 = arith.mulf %2, %2 : vector<8x32xf32>
    %cst = arith.constant dense<0.000000e+00> : vector<8xf32>
    %4 = vector.multi_reduction <add>, %3, %cst [1] : vector<8x32xf32> to vector<8xf32>
    %5 = vector.shape_cast %4 : vector<8xf32> to vector<8x1xf32>
    %cst_2 = arith.constant 3.200000e+01 : f32
    %6 = vector.broadcast %cst_2 : f32 to vector<8x1xf32>
    %7 = arith.divf %5, %6 : vector<8x1xf32>
    %cst_3 = arith.constant 9.99999997E-7 : f32
    %8 = vector.broadcast %cst_3 : f32 to vector<8x1xf32>
    %9 = arith.addf %7, %8 : vector<8x1xf32>
    %10 = math.rsqrt %9 : vector<8x1xf32>
    %c0_4 = arith.constant 0 : index
    %c0_5 = arith.constant 0 : index
    %c0_6 = arith.constant 0 : index
    %11 = vector.load %arg4[%c0_4, %c0_5, %c0_6] : memref<1x1x32xbf16, #tpu.memory_space<vmem>>, vector<1x1x32xbf16>
    %12 = vector.shape_cast %11 : vector<1x1x32xbf16> to vector<1x32xbf16>
    %13 = math.tanh %12 : vector<1x32xbf16>
    %c0_7 = arith.constant 0 : index
    %c0_8 = arith.constant 0 : index
    %c0_9 = arith.constant 0 : index
    %14 = vector.load %arg2[%c0_7, %c0_8, %c0_9] : memref<1x8x32xbf16, #tpu.memory_space<vmem>>, vector<1x8x32xbf16>
    %15 = vector.shape_cast %14 : vector<1x8x32xbf16> to vector<8x32xbf16>
    %16 = vector.broadcast %10 : vector<8x1xf32> to vector<8x32xf32>
    %17 = arith.mulf %2, %16 : vector<8x32xf32>
    %18 = arith.extf %13 : vector<1x32xbf16> to vector<1x32xf32>
    %19 = vector.broadcast %18 : vector<1x32xf32> to vector<8x32xf32>
    %20 = arith.mulf %17, %19 : vector<8x32xf32>
    %21 = arith.truncf %20 : vector<8x32xf32> to vector<8x32xbf16>
    %22 = arith.addf %15, %21 : vector<8x32xbf16>
    %c0_10 = arith.constant 0 : index
    %c0_11 = arith.constant 0 : index
    %c0_12 = arith.constant 0 : index
    %23 = vector.load %arg5[%c0_10, %c0_11, %c0_12] : memref<1x8x32xbf16, #tpu.memory_space<vmem>>, vector<1x8x32xbf16>
    %24 = vector.shape_cast %23 : vector<1x8x32xbf16> to vector<8x32xbf16>
    %25 = vector.shape_cast %22 : vector<8x32xbf16> to vector<1x8x32xbf16>
    tpu.vector_store %arg5[%c0_10, %c0_11, %c0_12], %25 {strides = array<i32>} : memref<1x8x32xbf16, #tpu.memory_space<vmem>>, vector<1x8x32xbf16>,
    return
  }
  func.func @transform_0(%arg0: i32, %arg1: i32) -> (i32, i32, i32) {
    %c0_i32 = arith.constant 0 : i32
    %c0_i32_0 = arith.constant 0 : i32
    return %arg0, %arg1, %c0_i32 : i32, i32, i32
  }
  func.func @transform_1(%arg0: i32, %arg1: i32) -> (i32, i32, i32) {
    %c0_i32 = arith.constant 0 : i32
    %c0_i32_0 = arith.constant 0 : i32
    return %arg0, %arg1, %c0_i32 : i32, i32, i32
  }
  func.func @transform_2(%arg0: i32, %arg1: i32) -> (i32, i32, i32) {
    %c0_i32 = arith.constant 0 : i32
    %c0_i32_0 = arith.constant 0 : i32
    %c0_i32_1 = arith.constant 0 : i32
    return %arg0, %c0_i32, %c0_i32_0 : i32, i32, i32
  }
  func.func @transform_3(%arg0: i32, %arg1: i32) -> (i32, i32, i32) {
    %c0_i32 = arith.constant 0 : i32
    %c0_i32_0 = arith.constant 0 : i32
    return %arg0, %arg1, %c0_i32 : i32, i32, i32
  }
}

</mosaic_0001>

<bundles_post_ra>
// kernel: tpu_custom_call.1
= control target key start
LH: loop header
LB: loop body
LE: loop exit
PB: predicated region body
PF: predicated region fallthrough
CT: control target
= control target key end

     0   :  { %8 = vsyncpa [#allocation3], 0  ;;  %s789_s0 = inlined_call_operand.hbm [shape: bf16[2,8,32], index: 0, kind: input, shape index: {}, may-alias: {0,3}]   ;;  %s790_s1 = inlined_call_operand.vmem [shape: bf16[2,8,32], index: 1, kind: input, shape index: {}]   ;;  %s791_s2 = inlined_call_operand.vmem [shape: bf16[2,1,32], index: 2, kind: input, shape index: {}]   ;;  %s792_s3 = inlined_call_operand.hbm [shape: bf16[2,8,32], index: 3, kind: output, shape index: {}, may-alias: {0,3}]  }
   0x1   :  { %10 = vsyncpa [#allocation3 + $0x1], 0 }
   0x2   :  { %11 = vsyncpa [#allocation4], 0 }
   0x3   :  { %13 = vsyncpa [#allocation4 + $0x1], 0  ;;  %s605_s12 = smov 0   ;;  %s607_s13 = smov 0  }
   0x4   :  { %s609_s14 = smov 0   ;;  %s611_s15 = smov 0  }
   0x5   :  { %s613_s16 = smov 0   ;;  %s615_s17 = smov 0  }
   0x6 LB: > { %s389_s18 = sadd.s32 4294967295, %s581_s17   ;;  %s390_s19 = sadd.s32 4294967294, %s581_s17   ;;  %s581_s17 = sphi %s615_s17, %s19_s17   ;;  %s577_s16 = sphi %s613_s16, %s808_s16   ;;  %s573_s15 = sphi %s611_s15, %s807_s15   ;;  %s569_s14 = sphi %s609_s14, %s806_s14   ;;  %s565_s13 = sphi %s607_s13, %s805_s13   ;;  %s561_s12 = sphi %s605_s12, %s804_s12  }
   0x7   : > { %s31_s20 = sadd.s32 1, %s577_s16  ;;  %s40_s21 = sadd.s32 1, %s569_s14 }
   0x8   : > { %p33_p0 = scmp.ge.s32.totalorder %s31_s20, 2  ;;  %p47_p1 = scmp.ne.s32.totalorder %s569_s14, %s565_s13 }
   0x9   : > { %p48_p2 = scmp.eq.s32.totalorder %s581_s17, 0  ;;  %p53_p3 = scmp.ne.s32.totalorder %s565_s13, %s561_s12 }
   0xa   : > { %s810_s20 = smov (%p33_p0, %s31_s20), 0  ;;  %p54_p5 = scmp.eq.s32.totalorder %s389_s18, 0 }
   0xb   : > { %p646_p4 = por %p48_p2, %p47_p1  ;;  %s35_s23 = ssub.s32 %s577_s16, %s810_s20 }
   0xc   : > { %p133_p6 = scmp.eq.s32.totalorder %s389_s18, 1  ;;  %p38_p7 = scmp.eq.s32.totalorder %s35_s23, 0 }
   0xd   : > { %p652_p8 = por %p54_p5, %p53_p3  ;;  %p139_p10 = scmp.eq.s32.totalorder %s390_s19, 1 }
   0xe   : > { %p656_p9 = por %p133_p6, %p47_p1  ;;  %p415_p13 = scmp.lt.s32.totalorder %s581_s17, 2 }
   0xf   : > { %s661_s26 = scalar_select %p38_p7, %s569_s14, %s40_s21  }
  0x10   : > { %s796_s25 = scalar_select %p656_p9, 1, 0 }
  0x11   : > { %p663_p11 = por %p139_p10, %p53_p3  ;;  %s159_s28 = sand.u32 1, %s569_s14  }
  0x12   : > { %s393_s29 = sshll.u32 %s159_s28, 2  ;;  %s394_s30 = sshll.u32 %s577_s16, 6 }
  0x13   : > { %s797_s27 = scalar_select %p663_p11, 1, 0 }
  0x14   : > { %s674_s6 = scalar_lea.hbm %s789_s0, %s394_s30  ;;  %s163_s7 = scalar_lea.vmem [#allocation2], %s393_s29 }
  0x15   : > { %s171_s8 = sshll.u32 %s163_s7, 4  ;;  %p680_p0 = pnand %p415_p13, %p646_p4  ;;  %s676_s8 = int_to_ptr.vmem [resolvable:$true] %s171_s8 }
  0x16   : > { %s160_s10 = scalar_lea.sflag [#allocation3], %s159_s28  ;;  %s469_s11 = scalar_lea.hbm %s674_s6, 64 }
  0x17   : > { %p470_p3 = scmp.ne.s32.totalorder %s674_s6, %s469_s11  ;;  %p471_p5 = pneg %p680_p0 }
  0x18   : > { %s474_s21 = scalar_lea.hbm %s789_s0, 128  ;;  %p475_p4 = scmp.lt.u32.totalorder %s674_s6, %s789_s0 }
  0x19   : > { %p472_p6 = pnand %p471_p5, %p470_p3  ;;  %p476_p10 = scmp.lt.u32.totalorder %s474_s21, %s469_s11 }
  0x1a   : > { %p478_p12 = scmp.lt.u32.totalorder %s469_s11, %s674_s6 }
  0x1b   : > { %p473_p7 = pneg %p472_p6  ;;  %p477_p13 = por %p476_p10, %p475_p4 }
  0x1d   : > { %p479_p1 = por %p478_p12, %p477_p13 }
  0x1f   : > { %p480_p2 = pnand %p479_p1, %p473_p7 }
  0x21   : > { %483 = shalt.err (!%p480_p2)
}
  0x22   : > { %s484_s28 = scalar_lea.vmem %s676_s8, 64  ;;  %s583_s29 = smov [#allocation2]  }
  0x23   : > { %p485_p3 = scmp.ne.s32.totalorder %s676_s8, %s484_s28  ;;  %s489_s30 = sshll.u32 %s583_s29, 4  ;;  %s490_s30 = int_to_ptr.vmem [resolvable:$false] %s489_s30 }
  0x24   : > { %s491_s4 = scalar_lea.vmem %s490_s30, 128  ;;  %p492_p9 = scmp.lt.s32.totalorder %s676_s8, %s490_s30 }
  0x25   : > { %p487_p6 = pnand %p485_p3, %p471_p5  ;;  %p493_p4 = scmp.lt.s32.totalorder %s491_s4, %s484_s28 }
  0x27   : > { %p488_p11 = pneg %p487_p6  ;;  %p494_p10 = por %p493_p4, %p492_p9 }
  0x29   : > { %p495_p12 = pnand %p494_p10, %p488_p11 }
  0x2b   : > { %498 = shalt.err (!%p495_p12)
}
  0x2c   : > { %410 = dma.hbm_to_vmem [thread:$0]  (!%p680_p0), %s674_s6, 64, %s676_s8, %s160_s10  }
  0x2d   : > { %p799_p1 = scmp.lt.s32.totalorder %s581_s17, 3  ;;  %p800_p2 = scmp.ge.s32.totalorder %s581_s17, 1 }
  0x2f   : > { %p193_p5 = pnand %p800_p2, %p799_p1 }
  0x30   : > { %s716_s5 = sand.u32 (!%p193_p5), 1, %s565_s13  }
  0x31   : > { %196 = sbr.rel (%p193_p5) target bundleno = 248 (0xf8), region = 32  ;;  %s396_s7 = sshll.u32 (!%p193_p5), %s716_s5, 2 }
  0x32   : > { %s199_s11 = scalar_lea.sflag (!%p193_p5), [#allocation3], %s716_s5  ;;  %s202_s9 = scalar_lea.vmem (!%p193_p5), [#allocation2], %s396_s7 }
  0x38   : > { %552 = dma.done.wait (%p652_p8), %s199_s11, 64  }
  0x39   : > { %554 = vsyncadd (%p652_p8), %s199_s11, 4294967232  ;;  %p235_p9 = scmp.lt.s32.totalorder %s573_s15, 1  ;;  %vm248_vm0 = vcmask 261120   ;;  %v261_v7 = vlaneseq  ;;  %v258_v17 = vld [vmem:[%s202_s9] sm:$0xf]  ;;  %s400_s23 = sshll.u32 %s573_s15, 6 }
  0x3a   : > { %s234_s28 = scalar_lea.vmem [#allocation5], %s396_s7  ;;  %vm268_vm1 = vcmask 257024   ;;  %s740_s11 = scalar_lea.hbm %s792_s3, %s400_s23 }
  0x3b   : > { %s236_s6 = scalar_select %p235_p9, %s573_s15, 1  ;;  %v262_v9 = vshrl.u32 %v261_v7, 7 }
  0x3c   : > { %s285_s29 = sshll.u32 %s234_s28, 4  ;;  %p801_p11 = scmp.ne.s32.totalorder %s796_s25, 0  ;;  %s742_s29 = int_to_ptr.vmem [resolvable:$true] %s285_s29 }
  0x3d   : > { %s398_s8 = sshll.u32 %s236_s6, 2  ;;  %s244_s24 = scalar_lea.vmem %s791_s2, %s236_s6  ;;  %v263_v12 = vsub.s32 0, %v262_v9 }
  0x3e   : > { %s241_s19 = scalar_lea.vmem %s790_s1, %s398_s8  ;;  %v256_v4 = vld [vmem:[%s244_s24] sm:$0x1]  ;;  %s271_s6 = scalar_lea.sflag [#allocation4], %s716_s5 }
  0x3f   : > { %v245_v0 = vld [vmem:[%s241_s19] sm:$0xf]  ;;  %465 = vtanh.bf16 %v256_v4  ;;  %s499_s9 = scalar_lea.vmem %s742_s29, 64  ;;  %s584_s15 = smov [#allocation5]  }
  0x40   : > { %v246_v1 = vunpack.c.l.bf16 %v245_v0  ;;  %p500_p8 = scmp.ne.s32.totalorder %s742_s29, %s499_s9  ;;  %s503_s7 = sshll.u32 %s584_s15, 4  ;;  %s504_s7 = int_to_ptr.vmem [resolvable:$false] %s503_s7 }
  0x41   : > { %s505_s8 = scalar_lea.vmem %s504_s7, 128  ;;  %p506_p13 = scmp.lt.s32.totalorder %s742_s29, %s504_s7 }
  0x42   : > { %v247_v2 = vmul.f32 %v246_v1, %v246_v1  ;;  %p501_p0 = pnand %p500_p8, %p801_p11  ;;  %p507_p3 = scmp.lt.s32.totalorder %s505_s8, %s499_s9 }
  0x44   : > { %v249_v3 = vsel %vm248_vm0, %v247_v2, 0.0  ;;  %p502_p7 = pneg %p501_p0  ;;  %p508_p6 = por %p507_p3, %p506_p13 }
  0x45   : > { %250 = vadd.xlane.f32.xlu0 %v249_v3 }
  0x46   : > { %p509_p4 = pnand %p508_p6, %p502_p7 }
  0x4a   : > { %v466_v10 = vpop.eup %465 }
  0x4b   : > { %v260_v11 = vunpack.c.l.bf16 %v466_v10 }
  0x4d   : > { %v264_v13 = vrot.slane %v260_v11, %v263_v12 }
  0xd2   : > { %v251_v5 = vpop.xlane.xlu0 %250 }
  0xd3   : > { %v253_v6 = vmul.f32 0.03125, %v251_v5 }
  0xd5   : > { %v254_v8 = vadd.f32 1e-06, %v253_v6 }
  0xd7   : > { %467 = vrsqrt.f32 %v254_v8 }
  0xe1   : > { %v468_v14 = vpop.eup %467 }
  0xe2   : > { %v259_v15 = vmul.f32 %v468_v14, %v246_v1 }
  0xe4   : > { %v265_v16 = vmul.f32 %v264_v13, %v259_v15 }
  0xe6   : > { %v266_v18 = vpack.c.bf16 %v265_v16, %v265_v16 }
  0xe8   : > { %v267_v19 = vadd.bf16 %v266_v18, %v258_v17 }
  0xea   : > { %269 = vst.msk [vmem:[%s234_s28] sm:$0xf] %vm268_vm1, %v267_v19 }
  0xeb   : > { %512 = shalt.err (!%p509_p4)
}
  0xec   : > { %s513_s5 = scalar_lea.hbm %s740_s11, 64  ;;  %s517_s19 = scalar_lea.hbm %s792_s3, 128 }
  0xed   : > { %p514_p10 = scmp.ne.s32.totalorder %s740_s11, %s513_s5  ;;  %p518_p2 = scmp.lt.u32.totalorder %s740_s11, %s792_s3 }
  0xee   : > { %p519_p5 = scmp.lt.u32.totalorder %s517_s19, %s513_s5  ;;  %p521_p8 = scmp.lt.u32.totalorder %s513_s5, %s740_s11 }
  0xef   : > { %p515_p12 = pnand %p514_p10, %p801_p11 }
  0xf0   : > { %p520_p9 = por %p519_p5, %p518_p2 }
  0xf1   : > { %p516_p1 = pneg %p515_p12 }
  0xf2   : > { %p522_p0 = por %p521_p8, %p520_p9 }
  0xf4   : > { %p523_p7 = pnand %p522_p0, %p516_p1 }
  0xf6   : > { %526 = shalt.err (!%p523_p7)
}
  0xf7   : > { %405 = dma.vmem_to_hbm [thread:$0]  (%p801_p11), %s742_s29, 64, %s740_s11, %s271_s6  }
  0xf8 PF: > { %s297_s24 = sand.u32 1, %s561_s12   ;;  %p802_p13 = scmp.ne.s32.totalorder %s797_s27, 0 }
  0xf9   : > { %p803_p3 = scmp.ge.s32.totalorder %s581_s17, 2  ;;  %s298_s23 = scalar_lea.sflag [#allocation4], %s297_s24 }
  0xfb   : > { %p412_p6 = pnand %p803_p3, %p802_p13 }
  0xfd   : > { %556 = dma.done.wait (!%p412_p6), %s298_s23, 64  }
  0xfe   : > { %558 = vsyncadd (!%p412_p6), %s298_s23, 4294967232  ;;  %s19_s17 = sadd.s32 1, %s581_s17   ;;  %s804_s12 = smov %s565_s13 }
  0xff   : > { %p16_p4 = scmp.ge.s32.totalorder %s19_s17, 4   ;;  %s805_s13 = smov %s569_s14 }
 0x100   : > { %s806_s14 = smov %s661_s26  ;;  %s807_s15 = smov %s577_s16 }
 0x101   : > { %s808_s16 = smov %s810_s20  ;;  %18 = sbr.rel (!%p16_p4) target bundleno = 6 (0x6), region = 83 }
 0x108   :  { %303 = vsyncpa [#allocation3], 1 }
 0x109   :  { %305 = vsyncpa [#allocation3 + $0x1], 1 }
 0x10a   :  { %306 = vsyncpa [#allocation4], 1 }
 0x10b   :  { %308 = vsyncpa [#allocation4 + $0x1], 1 }

</bundles_post_ra>
